<compile_context>
chip_gen: v6e
topology: v6e:2x2x1
jax: 0.10.0
libtpu: 0.0.40
codegen_flags: <defaults>
</compile_context>

<pallas_src>
import functools

import jax
import jax.numpy as jnp
from jax import lax
from jax.experimental import pallas as pl
from jax.experimental.pallas import tpu as pltpu


def _roll_rows(x, shift, n_rows):
    """Circular roll along axis 0 (sublanes); semantics match jnp.roll:
    result[i] = x[(i - shift) mod n_rows]."""
    return pltpu.roll(x, shift % n_rows, 0)


def _embedding_kernel(x_ref, rhs_ref, pos_ref, out_ref, *,
                      seq_len, c_in, frm_v, v_tot):
    # x_ref  : (TM, c_in+2) f32, TM a multiple of seq_len (whole sequences per block)
    #          cols = [frm_idx, car_idx, feat_0..feat_{c_in-1}]
    # rhs_ref: (3*c_in + v_tot, d_model) bf16 = [w0; w1; w2; frm_tab; car_tab]
    # pos_ref: (TM, 1) f32 positional value per row (pre-tiled over sequences)
    # out_ref: (TM, d_model) f32
    tm = x_ref.shape[0]
    x = x_ref[...]
    feats = x[:, 2:2 + c_in]                        # (TM, c_in) f32
    idx_f = x[:, 0:1].astype(jnp.int32)             # (TM, 1)
    idx_c = x[:, 1:2].astype(jnp.int32) + frm_v     # offset into concatenated table
    # (valid inputs keep idx_f in [0, frm_v) and idx_c in [frm_v, v_tot): disjoint)

    # Circular neighbour shift within each length-S sequence.  A whole-block
    # roll handles interior rows; rows at a sequence boundary are patched with
    # a second roll that lands on the other end of the *same* sequence
    # (TM is a multiple of S, so the wrap never leaves the block).
    sub = lax.broadcasted_iota(jnp.int32, (tm, c_in), 0)
    if (seq_len & (seq_len - 1)) == 0:              # S power of two: avoid integer mod
        s_in_seq = sub & (seq_len - 1)
    else:
        s_in_seq = sub % seq_len
    x_m1 = jnp.where(s_in_seq == 0,
                     _roll_rows(feats, 1 - seq_len, tm),   # row k*S     <- row k*S+S-1
                     _roll_rows(feats, 1, tm))             # row i       <- row i-1
    x_p1 = jnp.where(s_in_seq == seq_len - 1,
                     _roll_rows(feats, seq_len - 1, tm),   # row k*S+S-1 <- row k*S
                     _roll_rows(feats, -1, tm))            # row i       <- row i+1

    # Fused frame+car embedding lookup: one two-hot per row (padding_idx=0 is
    # honoured because table row 0 is zero).
    lane = lax.broadcasted_iota(jnp.int32, (tm, v_tot), 1)
    two_hot = ((lane == idx_f) | (lane == idx_c)).astype(jnp.float32)

    # Single MXU push: circular Conv1d (3 taps) + both embedding gathers.
    lhs = jnp.concatenate([x_m1, feats, x_p1, two_hot], axis=1)   # (TM, 3*c_in+v_tot)
    acc = jnp.dot(lhs.astype(rhs_ref.dtype), rhs_ref[...],
                  preferred_element_type=jnp.float32)             # (TM, d_model) f32

    # pos broadcasts over the d_model lanes (matches torch's (1,S,1) broadcast).
    out_ref[...] = (acc + pos_ref[...]).astype(out_ref.dtype)


def prepare_params(conv_w, frm_tab, car_tab, pos_embed, *, compute_dtype=jnp.bfloat16):
    """One-time parameter layout prep (hoisted out of the per-call hot path).

    conv_w   : (d_model, c_in, 3) Conv1d weight (circular padding, no bias)
    frm_tab  : (frm_embed, d_model), row 0 zero (padding_idx=0)
    car_tab  : (id_embed, d_model),  row 0 zero (padding_idx=0)
    pos_embed: (1, max_seq_len, 1)
    """
    d_model, c_in, k = conv_w.shape
    assert k == 3, "kernel_size=3 expected"
    # (d_model, c_in, 3) -> (3*c_in, d_model), kernel-tap-major rows (tap 0 = x[s-1]).
    w_flat = jnp.transpose(conv_w, (2, 1, 0)).reshape(3 * c_in, d_model)
    tab = jnp.concatenate([frm_tab, car_tab], axis=0)          # (frm_v + id_v, d_model)
    rhs = jnp.concatenate([w_flat, tab], axis=0).astype(compute_dtype)
    return dict(rhs=rhs, frm_v=int(frm_tab.shape[0]), v_tot=int(tab.shape[0]),
                d_model=int(d_model), c_in=int(c_in),
                pos=pos_embed.astype(jnp.float32))


def _rows_per_block(batch, seq_len, target_rows=1024):
    """Largest row-block that (a) is a whole number of sequences, (b) divides
    batch*seq_len, (c) satisfies the sublane-divisibility rule, (d) stays under
    target_rows (>=512 amortizes per-grid-step overhead while double-buffering
    comfortably inside v7x's 32 MiB scoped VMEM)."""
    bs = batch * seq_len
    best = bs                                    # fallback: single block
    for nb in range(1, batch + 1):
        if batch % nb:
            continue
        tm = nb * seq_len
        if tm % 8 != 0 and tm != bs:
            continue
        if tm <= target_rows:
            best = tm
    return best


def embedding_forward(x_group, params):
    """x_group: (B, S, c_in + 2) float32; returns (B, S, d_model) float32."""
    B, S, c_total = x_group.shape
    c_in = params["c_in"]
    assert c_total == c_in + 2
    d_model = params["d_model"]
    bs = B * S

    tm = _rows_per_block(B, S)
    grid = (bs // tm,)

    x2d = x_group.reshape(bs, c_total)                     # free reshape, no HBM pass
    # Tiny (tm, 1) positional column, identical for (and resident across) all blocks.
    pos_col = jnp.tile(params["pos"][0, :S, :], (tm // S, 1))

    kernel = functools.partial(_embedding_kernel, seq_len=S, c_in=c_in,
                               frm_v=params["frm_v"], v_tot=params["v_tot"])
    out = pl.pallas_call(
        kernel,
        out_shape=jax.ShapeDtypeStruct((bs, d_model), jnp.float32),
        grid=grid,
        in_specs=[
            pl.BlockSpec((tm, c_total), lambda i: (i, 0)),          # row-blocked input
            pl.BlockSpec(params["rhs"].shape, lambda i: (0, 0)),    # resident fused weights
            pl.BlockSpec((tm, 1), lambda i: (0, 0)),                # resident pos column
        ],
        out_specs=pl.BlockSpec((tm, d_model), lambda i: (i, 0)),
        compiler_params=pltpu.CompilerParams(dimension_semantics=("parallel",)),
    )(x2d, params["rhs"], pos_col)
    return out.reshape(B, S, d_model)


def reference_forward(x_group, conv_w, frm_tab, car_tab, pos_embed,
                      compute_dtype=jnp.float32):
    """Pure-JAX reference matching the PyTorch forward.  compute_dtype mimics
    the kernel's MXU-operand rounding (bf16 operands, f32 accumulation)."""
    f32 = jnp.float32
    S = x_group.shape[1]
    x = x_group[:, :, 2:].astype(compute_dtype).astype(f32)
    f = x_group[:, :, 0].astype(jnp.int32)
    c = x_group[:, :, 1].astype(jnp.int32)
    cw = conv_w.astype(compute_dtype).astype(f32)
    f_n = frm_tab.astype(compute_dtype).astype(f32)[f]
    c_n = car_tab.astype(compute_dtype).astype(f32)[c]
    xm1 = jnp.roll(x, 1, axis=1)
    xp1 = jnp.roll(x, -1, axis=1)
    t_n = (jnp.einsum('bsc,oc->bso', xm1, cw[:, :, 0]) +
           jnp.einsum('bsc,oc->bso', x,   cw[:, :, 1]) +
           jnp.einsum('bsc,oc->bso', xp1, cw[:, :, 2]))
    return t_n + f_n + c_n + pos_embed[:, :S, :]


if __name__ == "__main__":
    # config: d_model=32, c_in=4 (conv channels), max_seq_len=16, frm_embed=10, id_embed=12
    d_model, c_in, max_seq_len, frm_embed, id_embed = 32, 4, 16, 10, 12
    B, S = 2, 8

    key = jax.random.PRNGKey(0)
    k_pos, k_w, k_ft, k_ct, k_x, k_f, k_c = jax.random.split(key, 7)

    # parameters (deterministic, synthetic)
    pos_embed = jax.random.uniform(k_pos, (1, max_seq_len, 1), jnp.float32)   # torch.rand
    conv_w = 0.1 * jax.random.normal(k_w, (d_model, c_in, 3), jnp.float32)    # Conv1d, no bias
    frm_tab = jax.random.normal(k_ft, (frm_embed, d_model), jnp.float32).at[0].set(0.0)
    car_tab = jax.random.normal(k_ct, (id_embed, d_model), jnp.float32).at[0].set(0.0)

    # input x_group: (B, S, c_in + 2) -- [frm_idx, car_idx, features...]
    feats = jax.random.normal(k_x, (B, S, c_in), jnp.float32)
    f_ids = jax.random.randint(k_f, (B, S, 1), 0, frm_embed).astype(jnp.float32)
    c_ids = jax.random.randint(k_c, (B, S, 1), 0, id_embed).astype(jnp.float32)
    x_group = jnp.concatenate([f_ids, c_ids, feats], axis=-1)

    params = prepare_params(conv_w, frm_tab, car_tab, pos_embed)   # one-time layout prep
    out = jax.block_until_ready(embedding_forward(x_group, params))

    # Reference with the same bf16 operand rounding the kernel applies on the MXU;
    # remaining differences are f32 accumulation order only.
    ref = reference_forward(x_group, conv_w, frm_tab, car_tab, pos_embed,
                            compute_dtype=jnp.bfloat16)
    assert out.shape == (B, S, d_model)
    assert jnp.allclose(out, ref, atol=1e-4, rtol=1e-4), "mismatch vs reference"
    print("KERNEL_OK")
</pallas_src>

<mosaic_0001>
module attributes {stable_mosaic.version = 11 : i64} {
  func.func @_embedding_kernel(%arg0: i32, %arg1: memref<16x6xf32, #tpu.memory_space<vmem>>, %arg2: memref<34x32xbf16, #tpu.memory_space<vmem>>, %arg3: memref<16x1xf32, #tpu.memory_space<vmem>>, %arg4: memref<16x32xf32, #tpu.memory_space<vmem>>) attributes {dimension_semantics = [#tpu.dimension_semantics<parallel>], iteration_bounds = array<i64: 1>, scalar_prefetch = 0 : i64, scratch_operands = 0 : i64, tpu.core_type = #tpu.core_type<tc>, window_params = [{transform_indices = @transform_0, window_bounds = array<i64: 16, 6>}, {pipeline_mode = #tpu.pipeline_mode<synchronous>, transform_indices = @transform_1, window_bounds = array<i64: 34, 32>}, {pipeline_mode = #tpu.pipeline_mode<synchronous>, transform_indices = @transform_2, window_bounds = array<i64: 16, 1>}, {transform_indices = @transform_3, window_bounds = array<i64: 16, 32>}]} {
    %c0 = arith.constant 0 : index
    %c0_0 = arith.constant 0 : index
    %0 = vector.load %arg1[%c0, %c0_0] : memref<16x6xf32, #tpu.memory_space<vmem>>, vector<16x6xf32>
    %1 = vector.extract_strided_slice %0 {offsets = [0, 2], sizes = [16, 4], strides = [1, 1]} : vector<16x6xf32> to vector<16x4xf32>
    %2 = vector.extract_strided_slice %0 {offsets = [0, 0], sizes = [16, 1], strides = [1, 1]} : vector<16x6xf32> to vector<16x1xf32>
    %3 = arith.fptosi %2 : vector<16x1xf32> to vector<16x1xi32>
    %4 = vector.extract_strided_slice %0 {offsets = [0, 1], sizes = [16, 1], strides = [1, 1]} : vector<16x6xf32> to vector<16x1xf32>
    %5 = arith.fptosi %4 : vector<16x1xf32> to vector<16x1xi32>
    %c10_i32 = arith.constant 10 : i32
    %6 = vector.broadcast %c10_i32 : i32 to vector<16x1xi32>
    %7 = arith.addi %5, %6 : vector<16x1xi32>
    %8 = tpu.iota {dimensions = array<i32: 0>} : vector<16x4xi32>
    %c7_i32 = arith.constant 7 : i32
    %9 = vector.broadcast %c7_i32 : i32 to vector<16x4xi32>
    %10 = arith.andi %8, %9 : vector<16x4xi32>
    %c0_i32 = arith.constant 0 : i32
    %11 = vector.broadcast %c0_i32 : i32 to vector<16x4xi32>
    %12 = arith.cmpi eq, %10, %11 : vector<16x4xi32>
    %c9_i32 = arith.constant 9 : i32
    %13 = tpu.dynamic_rotate %1 by %c9_i32 dim 0 : vector<16x4xf32>, i32 -> vector<16x4xf32>
    %c1_i32 = arith.constant 1 : i32
    %14 = tpu.dynamic_rotate %1 by %c1_i32 dim 0 : vector<16x4xf32>, i32 -> vector<16x4xf32>
    %15 = arith.select %12, %13, %14 : vector<16x4xi1>, vector<16x4xf32>
    %c7_i32_1 = arith.constant 7 : i32
    %16 = vector.broadcast %c7_i32_1 : i32 to vector<16x4xi32>
    %17 = arith.cmpi eq, %10, %16 : vector<16x4xi32>
    %c7_i32_2 = arith.constant 7 : i32
    %18 = tpu.dynamic_rotate %1 by %c7_i32_2 dim 0 : vector<16x4xf32>, i32 -> vector<16x4xf32>
    %c15_i32 = arith.constant 15 : i32
    %19 = tpu.dynamic_rotate %1 by %c15_i32 dim 0 : vector<16x4xf32>, i32 -> vector<16x4xf32>
    %20 = arith.select %17, %18, %19 : vector<16x4xi1>, vector<16x4xf32>
    %21 = tpu.iota {dimensions = array<i32: 1>} : vector<16x22xi32>
    %22 = vector.broadcast %3 : vector<16x1xi32> to vector<16x22xi32>
    %23 = arith.cmpi eq, %21, %22 : vector<16x22xi32>
    %24 = vector.broadcast %7 : vector<16x1xi32> to vector<16x22xi32>
    %25 = arith.cmpi eq, %21, %24 : vector<16x22xi32>
    %26 = arith.ori %23, %25 : vector<16x22xi1>
    %27 = arith.extui %26 : vector<16x22xi1> to vector<16x22xi32>
    %28 = arith.sitofp %27 : vector<16x22xi32> to vector<16x22xf32>
    %29 = tpu.concatenate %15, %1, %20, %28 in 1 : vector<16x4xf32>, vector<16x4xf32>, vector<16x4xf32>, vector<16x22xf32> -> vector<16x34xf32>
    %30 = arith.truncf %29 : vector<16x34xf32> to vector<16x34xbf16>
    %c0_3 = arith.constant 0 : index
    %c0_4 = arith.constant 0 : index
    %31 = vector.load %arg2[%c0_3, %c0_4] : memref<34x32xbf16, #tpu.memory_space<vmem>>, vector<34x32xbf16>
    %cst = arith.constant dense<0.000000e+00> : vector<16x32xf32>
    %32 = tpu.matmul %30, %31, %cst {dimension_numbers = #tpu.dot_dimension_numbers<[1], [0], [0], [1], [0, 0, 1, 1], [], []>} : vector<16x34xbf16>, vector<34x32xbf16>, vector<16x32xf32> -> vector<16x32xf32>
    %c0_5 = arith.constant 0 : index
    %c0_6 = arith.constant 0 : index
    %33 = vector.load %arg3[%c0_5, %c0_6] : memref<16x1xf32, #tpu.memory_space<vmem>>, vector<16x1xf32>
    %34 = vector.broadcast %33 : vector<16x1xf32> to vector<16x32xf32>
    %35 = arith.addf %32, %34 : vector<16x32xf32>
    %c0_7 = arith.constant 0 : index
    %c0_8 = arith.constant 0 : index
    %36 = vector.load %arg4[%c0_7, %c0_8] : memref<16x32xf32, #tpu.memory_space<vmem>>, vector<16x32xf32>
    tpu.vector_store %arg4[%c0_7, %c0_8], %35 {strides = array<i32>} : memref<16x32xf32, #tpu.memory_space<vmem>>, vector<16x32xf32>,
    return
  }
  func.func @transform_0(%arg0: i32) -> (i32, i32) {
    %c0_i32 = arith.constant 0 : i32
    %c0_i32_0 = arith.constant 0 : i32
    return %arg0, %c0_i32 : i32, i32
  }
  func.func @transform_1(%arg0: i32) -> (i32, i32) {
    %c0_i32 = arith.constant 0 : i32
    %c0_i32_0 = arith.constant 0 : i32
    %c0_i32_1 = arith.constant 0 : i32
    return %c0_i32, %c0_i32_0 : i32, i32
  }
  func.func @transform_2(%arg0: i32) -> (i32, i32) {
    %c0_i32 = arith.constant 0 : i32
    %c0_i32_0 = arith.constant 0 : i32
    %c0_i32_1 = arith.constant 0 : i32
    return %c0_i32, %c0_i32_0 : i32, i32
  }
  func.func @transform_3(%arg0: i32) -> (i32, i32) {
    %c0_i32 = arith.constant 0 : i32
    %c0_i32_0 = arith.constant 0 : i32
    return %arg0, %c0_i32 : i32, i32
  }
}

</mosaic_0001>

<bundles_post_ra>
// kernel: tpu_custom_call.1
= control target key start
LH: loop header
LB: loop body
LE: loop exit
PB: predicated region body
PF: predicated region fallthrough
CT: control target
= control target key end

     0   :  { %v291_v2 = vmov 0   ;;  %v292_v4 = vmov 1   ;;  %v293_v8 = vmov 0.0   ;;  %s369_s0 = inlined_call_operand.vmem [shape: f32[16,6], index: 0, kind: input, shape index: {}]   ;;  %s370_s1 = inlined_call_operand.vmem [shape: bf16[34,32], index: 1, kind: input, shape index: {}]   ;;  %s371_s2 = inlined_call_operand.vmem [shape: f32[16,1], index: 2, kind: input, shape index: {}]   ;;  %s372_s3 = inlined_call_operand.hbm [shape: f32[16,32], index: 3, kind: output, shape index: {}]  }
   0x1   :  { %v16_v0 = vld [vmem:[%s369_s0] sm:$0xff]  ;;  %v17_v1 = vld [vmem:[%s369_s0 + $0x8] sm:$0xff]  ;;  %243 = vset.pattern.permute.xlu0 %v291_v2  ;;  %244 = vset.pattern.permute.xlu1 %v292_v4 }
   0x2   :  { %v229_v3 = vtrunc.f32 %v16_v0  ;;  %v231_v5 = vtrunc.f32 %v17_v1  ;;  %219 = vmatprep.subr.bf16.mxu0 %v293_v8 }
   0x4   :  { %v230_v6 = vcvt.f32.s32 %v229_v3  ;;  %v232_v7 = vcvt.f32.s32 %v231_v5 }
   0x5   :  { %8 = vsyncpa [#allocation3], 0  ;;  %v245_v11 = vpack.i.bf16 %v17_v1, %v16_v0  ;;  %s294_s16 = smov 126   ;;  %s295_s0 = smov 2   ;;  %v22_v12 = vlaneseq  ;;  %vm145_vm0 = vcmask 1040384   ;;  %v267_v16 = vld [vmem:[%s370_s1 + $0x8] sm:$0xff]  }
   0x6   :  { %56 = vperm.xlu0 %243, %v230_v6   ;;  %v20_v9 = vadd.s32 10, %v230_v6  ;;  %v21_v10 = vadd.s32 10, %v232_v7  ;;  %v266_v13 = vld [vmem:[%s370_s1 + $0x10] ss:$0 sps:$4 sm:$0x11]   ;;  %v268_v23 = vld [vmem:[%s370_s1] sm:$0xff]  }
   0x7   :  { %v23_v14 = vshrl.u32 %v22_v12, 7  ;;  %v147_v15 = vsel %vm145_vm0, %v266_v13, 0  ;;  %v54_v18 = vand.u32 127, %v22_v12  ;;  %vm296_vm6 = vmmov 0   ;;  %s297_s1 = smov 12   ;;  %v115_v48 = vld [vmem:[%s371_s2 + $0x8] sm:$0xff] }
   0x8   :  { %64 = vperm.xlu1 %244, %v20_v9   ;;  %220 = vmatpush3.bf16.msra.mxu0 %v147_v15  ;;  %s298_s25 = smov 8   ;;  %v114_v49 = vld [vmem:[%s371_s2] sm:$0xff]  ;;  %vm99_vm14 = vcmask 31744   ;;  %vm102_vm15 = vcmask 64512   ;;  %vm105_vm0 = vcmask 97280   ;;  %s299_s2 = smov [#allocation2]  }
   0x9   :  { %221 = vmatprep.subr.bf16.mxu0 %v293_v8  ;;  %v24_v20 = vadd.s32 8, %v23_v14  ;;  %v25_v22 = vand.u32 7, %v23_v14  ;;  %225 = vmatprep.mubr.msk.bf16.mxu0 %vm296_vm6, %v293_v8  ;;  %vm39_vm8 = vcmp.lt.s32.totalorder %v23_v14, 1  ;;  %vm48_vm10 = vcmp.lt.s32.totalorder %v23_v14, 7  ;;  %s198_s28 = sshll.u32 %s299_s2, 4  ;;  %s199_s28 = int_to_ptr.vmem [resolvable:$true] %s198_s28 }
   0xa   :  { %59 = vperm.xlu0 %243, %v232_v7   ;;  %s269_s29 = scalar_lea.vmem %s199_s28, 256  ;;  %p274_p1 = scmp.lt.s32.totalorder %s199_s28, %s199_s28 }
   0xb   :  { %v26_v25 = vand.u32 7, %v24_v20  ;;  %vm336_vm9 = vcmp.eq.s32.totalorder %v25_v22, 0  ;;  %vm344_vm12 = vcmp.eq.s32.totalorder %v25_v22, 7  ;;  %p270_p0 = scmp.ne.s32.totalorder %s199_s28, %s269_s29  ;;  %p275_p2 = scmp.lt.s32.totalorder %s269_s29, %s269_s29 }
   0xc   :  { %67 = vperm.xlu1 %244, %v21_v10   ;;  %222 = vmatpush3.bf16.msra.mxu0 %v267_v16 }
   0xd   :  { %223 = vmatprep.subr.bf16.mxu0 %v293_v8  ;;  %vm340_vm11 = vcmp.eq.s32.totalorder %v26_v25, 0  ;;  %vm45_vm13 = vcmp.eq.s32.totalorder %v26_v25, 7  ;;  %p276_p3 = por %p275_p2, %p274_p1 }
   0xe   :  { %246 = vrot.lane.b32.xlu0 %v245_v11, %s294_s16 }
   0xf   :  { %p277_p4 = pnand %p276_p3, %p270_p0 }
  0x10   :  { %251 = vrot.lane.b32.xlu1 %v245_v11, %s295_s0  ;;  %224 = vmatpush3.bf16.msra.mxu0 %v268_v23 }
  0x11   :  { %265 = vset.pattern.permute.xlu1 %v291_v2 }
  0x81   :  { %v57_v17 = vpop.permute.xlu0 %56 }
  0x82   :  { %vm61_vm2 = vcmp.eq.s32.totalorder %v54_v18, %v57_v17 }
  0x83   :  { %v65_v19 = vpop.permute.xlu1 %64 }
  0x84   :  { %vm69_vm1 = vcmp.eq.s32.totalorder %v54_v18, %v65_v19 }
  0x85   :  { %v60_v21 = vpop.permute.xlu0 %59  ;;  %vm71_vm3 = vmor %vm61_vm2, %vm69_vm1  ;;  %vm141_vm1 = vcmask 277504   ;;  %vm190_vm2 = vcmask 261120  }
  0x86   :  { %vm62_vm4 = vcmp.eq.s32.totalorder %v54_v18, %v60_v21  ;;  %v209_v28 = vsel %vm71_vm3, 1.0, %v293_v8 }
  0x87   :  { %v68_v24 = vpop.permute.xlu1 %67 }
  0x88   :  { %vm70_vm5 = vcmp.eq.s32.totalorder %v54_v18, %v68_v24 }
  0x89   :  { %vm72_vm7 = vmor %vm62_vm4, %vm70_vm5  ;;  %v247_v26 = vpop.permute.xlu0 %246 }
  0x8a   :  { %v210_v29 = vsel %vm72_vm7, 1.0, %v293_v8  ;;  %v249_v30 = vunpack.i.h.bf16 %v247_v26  ;;  %v248_v31 = vunpack.i.l.bf16 %v247_v26 }
  0x8b   :  { %v260_v32 = vpack.i.bf16 %v210_v29, %v209_v28  ;;  %v252_v50 = vpop.permute.xlu1 %251 }
  0x8c   :  { %v38_v35 = vrot.slane %v249_v30, 7  ;;  %v47_v36 = vrot.slane %v249_v30, 1  ;;  %v37_v37 = vrot.slane %v248_v31, 7  ;;  %v46_v38 = vrot.slane %v248_v31, 1 }
  0x8d   :  { %261 = vrot.lane.b32.xlu1 %v260_v32, %s297_s1  ;;  %v254_v51 = vunpack.i.h.bf16 %v252_v50  ;;  %v253_v52 = vunpack.i.l.bf16 %v252_v50 }
  0x8e   :  { %v40_v39 = vsel %vm39_vm8, %v37_v37, %v38_v35  ;;  %v41_v40 = vsel %vm39_vm8, %v38_v35, %v37_v37  ;;  %v49_v41 = vsel %vm48_vm10, %v46_v38, %v47_v36  ;;  %v50_v42 = vsel %vm48_vm10, %v47_v36, %v46_v38 }
  0x8f   :  { %v42_v43 = vsel %vm336_vm9, %v40_v39, %v41_v40  ;;  %v43_v44 = vsel %vm340_vm11, %v41_v40, %v40_v39  ;;  %v51_v45 = vsel %vm344_vm12, %v50_v42, %v49_v41  ;;  %v52_v46 = vsel %vm45_vm13, %v49_v41, %v50_v42 }
  0x90   :  { %v255_v47 = vpack.i.bf16 %v52_v46, %v51_v45  ;;  %v101_v57 = vsel %vm99_vm14, %v43_v44, %v254_v51  ;;  %v100_v58 = vsel %vm99_vm14, %v42_v43, %v253_v52 }
  0x91   :  { %123 = vperm.xlu1 %265, %v115_v48  }
  0x92   :  { %256 = vrot.lane.b32.xlu0 %v255_v47, %s298_s25 }
  0x96   :  { %118 = vperm.xlu0 %243, %v114_v49  }
  0xff   :  { %v262_v53 = vpop.permute.xlu1 %261 }
 0x100   :  { %v264_v59 = vunpack.i.h.bf16 %v262_v53  ;;  %v263_v60 = vunpack.i.l.bf16 %v262_v53 }
 0x104   :  { %v257_v54 = vpop.permute.xlu0 %256 }
 0x105   :  { %v259_v55 = vunpack.i.h.bf16 %v257_v54  ;;  %v258_v56 = vunpack.i.l.bf16 %v257_v54 }
 0x107   :  { %v103_v61 = vsel %vm102_vm15, %v100_v58, %v258_v56  ;;  %v104_v62 = vsel %vm102_vm15, %v101_v57, %v259_v55 }
 0x108   :  { %v106_v63 = vsel %vm105_vm0, %v103_v61, %v263_v60  ;;  %v107_v0 = vsel %vm105_vm0, %v104_v62, %v264_v59 }
 0x109   :  { %v108_v1 = vpack.c.bf16 %v107_v0, %v106_v63 }
 0x10b   :  { %226 = vmatmul.mubr.msk.bf16.vlgmr.msra.gmra.mxu0 %vm141_vm1, %v108_v1 }
 0x10c   :  { %v124_v6 = vpop.permute.xlu1 %123 }
 0x111   :  { %v119_v2 = vpop.permute.xlu0 %118 }
 0x1cb   :  { %v183_v3 = vpop.f32.mrf.mxu0 }
 0x1cc   :  { %v184_v4 = vadd.f32 %v183_v3, %v119_v2 }
 0x1cd   :  { %v227_v5 = vpop.f32.mrf.mxu0 }
 0x1ce   :  { %191 = vst.msk [vmem:[#allocation2] sm:$0xff] %vm190_vm2, %v184_v4 }
 0x1cf   :  { %v186_v7 = vpop.f32.mrf.mxu0 }
 0x1d0   :  { %v187_v8 = vadd.f32 %v186_v7, %v124_v6 }
 0x1d1   :  { %v228_v9 = vpop.f32.mrf.mxu0 }
 0x1d2   :  { %192 = vst.msk [vmem:[#allocation2 + $0x8] sm:$0xff] %vm190_vm2, %v187_v8 }
 0x1d3   :  { %280 = shalt.err (!%p277_p4)
}
 0x1d4   :  { %s300_s30 = smov 128  }
 0x1d5   :  { %204 = dma.vmem_to_hbm [thread:$0]  %s199_s28, 256, %s372_s3, [#allocation3], %s300_s30, %s300_s30, %s298_s25  }
 0x1d6   :  { %289 = dma.done.wait [#allocation3], 256  }
 0x1d7   :  { %290 = vsyncadd [#allocation3], 4294967040 }
 0x1d8   :  { %208 = vsyncpa [#allocation3], 1 }

</bundles_post_ra>
